<compile_context>
chip_gen: v7x
topology: tpu7x:2x2x1
jax: 0.10.0
libtpu: 0.0.40
codegen_flags: <defaults>
</compile_context>

<pallas_src>
import jax
import jax.numpy as jnp
from jax.experimental import pallas as pl
from jax.experimental.pallas import tpu as pltpu


# ----------------------------------------------------------------------------
# Small helpers
# ----------------------------------------------------------------------------
def _round_up(x: int, m: int) -> int:
    return (x + m - 1) // m * m


def _sublane_pack(itemsize: int) -> int:
    # 8 for f32, 16 for bf16/f16, 32 for int8/fp8.
    return max(8, 32 // max(1, itemsize))


def _vmem_capacity_bytes() -> int:
    """Per-TensorCore VMEM capacity for the current generation."""
    try:
        info = pltpu.get_tpu_info()
        cap = getattr(info, "vmem_capacity_bytes", None)
        if cap:
            return int(cap)
    except Exception:
        pass
    try:
        kind = jax.devices()[0].device_kind.lower()
    except Exception:
        kind = ""
    if "v7" in kind or "7x" in kind:
        return 64 * 1024 * 1024          # v7x: 64 MiB / TC
    if any(t in kind for t in ("v4", "v5", "v6")):
        return 128 * 1024 * 1024         # v4/v5e/v6e: 128 MiB
    return 64 * 1024 * 1024              # conservative default


def _choose_tile_n(n_rows: int, pack: int, budget_rows: int,
                   prefer_min_steps: int = 2) -> int:
    """Row-tile size from a VMEM row budget, sublane-packed, >=2 grid steps
    when there are enough rows (so v7x megacore splits work across both TCs)."""
    budget_rows = max(pack, budget_rows)
    tile = min(budget_rows, _round_up(n_rows, pack), 2048)
    if prefer_min_steps > 1 and tile >= n_rows and n_rows > pack:
        tile = min(tile, _round_up(pl.cdiv(n_rows, prefer_min_steps), pack))
    if tile >= 128:
        tile = (tile // 128) * 128        # MXU-friendly (also keeps v5e happy)
    else:
        tile = _round_up(tile, pack)
    return max(pack, tile)


def _resident_row_budget(D, Vpad, in_bytes, w_bytes, out_bytes, vmem_budget):
    """How many rows per tile fit when W stays resident in VMEM."""
    resident = D * Vpad * w_bytes + 2 * Vpad * 4        # W (single-buffered) + bias
    slack = 2 * 1024 * 1024
    per_row = (2 * D * in_bytes                         # h, double-buffered
               + 4 * Vpad * out_bytes                   # 2 outputs, double-buffered
               + 12 * Vpad)                             # ~3 f32 intermediates
    avail = vmem_budget - resident - slack
    if avail <= 0:
        return 0
    return int(avail // per_row)


def _vtiled_tile_sizes(D, Vpad, in_bytes, w_bytes, out_bytes, vmem_budget,
                       pack, n_rows, max_tile_v=None):
    """Tile sizes for the vocab-tiled (online logsumexp) path.  TILE_V is a
    multiple of 128 that divides Vpad exactly, so the reduction never sees
    out-of-bounds garbage."""
    slack = 2 * 1024 * 1024
    tile_n = _choose_tile_n(n_rows, pack, 256)
    g_total = Vpad // 128
    while True:
        fixed = 2 * tile_n * D * in_bytes + 4 * tile_n * 4 + 2 * tile_n * 4
        per_col = 2 * D * w_bytes + 8 + 2 * tile_n * out_bytes + 8 * tile_n
        avail = vmem_budget - slack - fixed
        budget_cols = int(avail // per_col) if avail > 0 else 0
        cap = budget_cols if max_tile_v is None else min(budget_cols, max_tile_v)
        best = 0
        for g in range(1, g_total + 1):
            if g_total % g == 0 and 128 * g <= cap:
                best = 128 * g
        if best >= 128:
            return tile_n, best
        if tile_n <= pack:
            return tile_n, 128            # smallest legal tiles; compiler may spill
        tile_n = max(pack, tile_n // 2)


# ----------------------------------------------------------------------------
# Kernels
# ----------------------------------------------------------------------------
def _decoder_resident_kernel(h_ref, w_ref, b_ref, logp_ref, logits_ref):
    # h_ref: [TILE_N, D]   w_ref: [D, Vpad] (resident)   b_ref: [1, Vpad]
    # Padded vocab columns carry bias = -1e9, so no in-kernel mask is needed:
    # they never win the max and exp() underflows to exactly 0.
    logits = jnp.dot(h_ref[...], w_ref[...], preferred_element_type=jnp.float32)
    logits = logits + b_ref[...].astype(jnp.float32)

    m = jnp.max(logits, axis=-1, keepdims=True)
    shifted = logits - m
    lse = jnp.log(jnp.sum(jnp.exp(shifted), axis=-1, keepdims=True))

    logits_ref[...] = logits.astype(logits_ref.dtype)
    logp_ref[...] = (shifted - lse).astype(logp_ref.dtype)


def _decoder_vtiled_kernel(h_ref, w_ref, b_ref, logits_ref, lse_ref, m_sc, s_sc):
    # 2-D grid: i = row tile ("parallel"), j = vocab tile ("arbitrary").
    # Online logsumexp over the vocab tiles; logits written per (i, j) block,
    # lse written once at the last vocab tile.
    j = pl.program_id(1)

    @pl.when(j == 0)
    def _():
        m_sc[...] = jnp.full(m_sc.shape, -jnp.inf, m_sc.dtype)
        s_sc[...] = jnp.zeros(s_sc.shape, s_sc.dtype)

    logits = jnp.dot(h_ref[...], w_ref[...], preferred_element_type=jnp.float32)
    logits = logits + b_ref[...].astype(jnp.float32)
    logits_ref[...] = logits.astype(logits_ref.dtype)

    m_prev = m_sc[...]
    m_new = jnp.maximum(m_prev, jnp.max(logits, axis=-1, keepdims=True))
    s_sc[...] = (s_sc[...] * jnp.exp(m_prev - m_new)
                 + jnp.sum(jnp.exp(logits - m_new), axis=-1, keepdims=True))
    m_sc[...] = m_new

    @pl.when(j == pl.num_programs(1) - 1)
    def _():
        lse_ref[...] = (m_sc[...] + jnp.log(s_sc[...])).astype(lse_ref.dtype)


# ----------------------------------------------------------------------------
# pallas_call wrappers
# ----------------------------------------------------------------------------
def _run_resident(h2, W_p, b2, out_dtype, vmem_budget, tile_n):
    N_pad, D = h2.shape
    Vpad = W_p.shape[1]
    out_bytes = jnp.dtype(out_dtype).itemsize
    cost = pl.CostEstimate(
        flops=2 * N_pad * D * Vpad,
        transcendentals=N_pad * Vpad,
        bytes_accessed=int(h2.size * h2.dtype.itemsize
                           + W_p.size * W_p.dtype.itemsize
                           + b2.size * b2.dtype.itemsize
                           + 2 * N_pad * Vpad * out_bytes),
    )

    def call(single_buffer_consts):
        if single_buffer_consts:
            # Constant-index blocks are only fetched once; one buffer suffices.
            w_spec = pl.BlockSpec((D, Vpad), lambda i: (0, 0),
                                  pipeline_mode=pl.Buffered(1))
            b_spec = pl.BlockSpec((1, Vpad), lambda i: (0, 0),
                                  pipeline_mode=pl.Buffered(1))
        else:
            w_spec = pl.BlockSpec((D, Vpad), lambda i: (0, 0))
            b_spec = pl.BlockSpec((1, Vpad), lambda i: (0, 0))
        return pl.pallas_call(
            _decoder_resident_kernel,
            out_shape=(jax.ShapeDtypeStruct((N_pad, Vpad), out_dtype),   # log_probs
                       jax.ShapeDtypeStruct((N_pad, Vpad), out_dtype)),  # logits
            grid=(pl.cdiv(N_pad, tile_n),),
            in_specs=[pl.BlockSpec((tile_n, D), lambda i: (i, 0)), w_spec, b_spec],
            out_specs=(pl.BlockSpec((tile_n, Vpad), lambda i: (i, 0)),
                       pl.BlockSpec((tile_n, Vpad), lambda i: (i, 0))),
            compiler_params=pltpu.CompilerParams(
                dimension_semantics=("parallel",),
                vmem_limit_bytes=int(vmem_budget)),
            cost_estimate=cost,
        )(h2, W_p, b2)

    try:
        return call(True)
    except Exception:
        # pipeline_mode / Buffered(1) not supported by this JAX build: fall back
        # to default double-buffering (costs one extra D x Vpad VMEM buffer).
        return call(False)


def _run_vocab_tiled(h2, W_p, b2, out_dtype, vmem_budget, tile_n, tile_v):
    N_pad, D = h2.shape
    Vpad = W_p.shape[1]
    n_vt = Vpad // tile_v
    out_bytes = jnp.dtype(out_dtype).itemsize
    cost = pl.CostEstimate(
        flops=2 * N_pad * D * Vpad,
        transcendentals=N_pad * Vpad,
        bytes_accessed=int(n_vt * h2.size * h2.dtype.itemsize
                           + W_p.size * W_p.dtype.itemsize
                           + b2.size * b2.dtype.itemsize
                           + N_pad * Vpad * out_bytes + N_pad * 4),
    )
    logits, lse = pl.pallas_call(
        _decoder_vtiled_kernel,
        out_shape=(jax.ShapeDtypeStruct((N_pad, Vpad), out_dtype),   # logits
                   jax.ShapeDtypeStruct((N_pad, 1), jnp.float32)),   # logsumexp
        grid=(pl.cdiv(N_pad, tile_n), n_vt),
        in_specs=[pl.BlockSpec((tile_n, D), lambda i, j: (i, 0)),
                  pl.BlockSpec((D, tile_v), lambda i, j: (0, j)),
                  pl.BlockSpec((1, tile_v), lambda i, j: (0, j))],
        out_specs=(pl.BlockSpec((tile_n, tile_v), lambda i, j: (i, j)),
                   pl.BlockSpec((tile_n, 1), lambda i, j: (i, 0))),
        scratch_shapes=[pltpu.VMEM((tile_n, 1), jnp.float32),   # running max
                        pltpu.VMEM((tile_n, 1), jnp.float32)],  # running sum
        compiler_params=pltpu.CompilerParams(
            dimension_semantics=("parallel", "arbitrary"),
            vmem_limit_bytes=int(vmem_budget)),
        cost_estimate=cost,
    )(h2, W_p, b2)
    # Halved kernel HBM writes: log_probs is formed by the (fusable) consumer.
    log_probs = (logits.astype(jnp.float32) - lse).astype(out_dtype)
    return log_probs, logits


# ----------------------------------------------------------------------------
# Public API
# ----------------------------------------------------------------------------
def prepare_decoder_params(W, b):
    """One-time (init-time) padding of the readout parameters.

    W is zero-padded; the bias pad columns get -1e9 so padded logits never win
    the row max and their exp() underflows to exactly 0 -> no in-kernel mask.
    Returns (W_padded [D, Vpad], bias_padded [1, Vpad], valid_vocab).
    """
    D, V = W.shape
    Vpad = _round_up(V, 128)
    if Vpad != V:
        W = jnp.pad(W, ((0, 0), (0, Vpad - V)))
        b = jnp.pad(b, (0, Vpad - V), constant_values=-1e9)
    return W, b.reshape(1, Vpad), V


def mlp_decoder(h_V, W_p, b2, valid_v, *, force_vocab_tiled=False, max_tile_v=None):
    """h_V: [..., D]; W_p: [D, Vpad]; b2: [1, Vpad] (from prepare_decoder_params).
    Returns (log_probs, logits), each [..., valid_v] — same as the PyTorch module."""
    *lead, D = h_V.shape
    Vpad = W_p.shape[1]
    out_dtype = h_V.dtype
    in_bytes = jnp.dtype(h_V.dtype).itemsize
    w_bytes = jnp.dtype(W_p.dtype).itemsize
    out_bytes = jnp.dtype(out_dtype).itemsize
    pack = _sublane_pack(in_bytes)

    h2 = h_V.reshape(-1, D)
    N = h2.shape[0]
    N_pad = _round_up(N, pack)              # only to the sublane packing, not TILE_N
    if N_pad != N:
        h2 = jnp.pad(h2, ((0, N_pad - N), (0, 0)))

    vmem_budget = int(_vmem_capacity_bytes() * 0.85)   # ~54 MiB v7x, ~108 MiB v5e/v6e
    row_budget = _resident_row_budget(D, Vpad, in_bytes, w_bytes, out_bytes, vmem_budget)
    resident_bytes = D * Vpad * w_bytes

    if (not force_vocab_tiled) and resident_bytes <= vmem_budget // 2 and row_budget >= pack:
        tile_n = _choose_tile_n(N_pad, pack, row_budget)
        log_probs, logits = _run_resident(h2, W_p, b2, out_dtype, vmem_budget, tile_n)
    else:
        tile_n, tile_v = _vtiled_tile_sizes(D, Vpad, in_bytes, w_bytes, out_bytes,
                                            vmem_budget, pack, N_pad, max_tile_v)
        log_probs, logits = _run_vocab_tiled(h2, W_p, b2, out_dtype, vmem_budget,
                                             tile_n, tile_v)

    log_probs = log_probs[:N, :valid_v].reshape(*lead, valid_v)
    logits = logits[:N, :valid_v].reshape(*lead, valid_v)
    return log_probs, logits


# ----------------------------------------------------------------------------
# Self-test
# ----------------------------------------------------------------------------
if __name__ == "__main__":
    key = jax.random.PRNGKey(0)
    k_h, k_w, k_b, k_h2, k_w2, k_b2 = jax.random.split(key, 6)

    # --- Test 1: module-default shapes (resident-W single-pass path). -------
    batch, seq, hidden_dim, vocab = 2, 8, 32, 33
    bound = 1.0 / (hidden_dim ** 0.5)
    W = jax.random.uniform(k_w, (hidden_dim, vocab), jnp.float32, -bound, bound)
    b = jax.random.uniform(k_b, (vocab,), jnp.float32, -bound, bound)
    h_V = jax.random.normal(k_h, (batch, seq, hidden_dim), jnp.float32)

    W_p, b_p, V = prepare_decoder_params(W, b)       # padded once, at "init time"
    log_probs, logits = mlp_decoder(h_V, W_p, b_p, V)
    jax.block_until_ready((log_probs, logits))

    ref_logits = h_V @ W + b
    ref_logp = jax.nn.log_softmax(ref_logits, axis=-1)
    assert logits.shape == (batch, seq, vocab) and log_probs.shape == (batch, seq, vocab)
    assert jnp.allclose(logits, ref_logits, atol=1e-5), "logits mismatch (resident)"
    assert jnp.allclose(log_probs, ref_logp, atol=1e-5), "log_probs mismatch (resident)"

    # --- Test 2: exercise the vocab-tiled online-logsumexp fallback path. ---
    vocab2 = 300                                      # Vpad = 384 -> 3 vocab tiles
    W2 = jax.random.uniform(k_w2, (hidden_dim, vocab2), jnp.float32, -bound, bound)
    b2 = jax.random.uniform(k_b2, (vocab2,), jnp.float32, -bound, bound)
    h_V2 = jax.random.normal(k_h2, (batch, seq, hidden_dim), jnp.float32)

    W2_p, b2_p, V2 = prepare_decoder_params(W2, b2)
    log_probs2, logits2 = mlp_decoder(h_V2, W2_p, b2_p, V2,
                                      force_vocab_tiled=True, max_tile_v=128)
    jax.block_until_ready((log_probs2, logits2))

    ref_logits2 = h_V2 @ W2 + b2
    ref_logp2 = jax.nn.log_softmax(ref_logits2, axis=-1)
    assert jnp.allclose(logits2, ref_logits2, atol=1e-4), "logits mismatch (vocab-tiled)"
    assert jnp.allclose(log_probs2, ref_logp2, atol=1e-4), "log_probs mismatch (vocab-tiled)"

    print("KERNEL_OK")
</pallas_src>

<mosaic_0001>
module attributes {stable_mosaic.version = 11 : i64} {
  func.func @_decoder_resident_kernel(%arg0: i32, %arg1: memref<8x32xf32, #tpu.memory_space<vmem>>, %arg2: memref<32x128xf32, #tpu.memory_space<vmem>>, %arg3: memref<1x128xf32, #tpu.memory_space<vmem>>, %arg4: memref<8x128xf32, #tpu.memory_space<vmem>>, %arg5: memref<8x128xf32, #tpu.memory_space<vmem>>) attributes {dimension_semantics = [#tpu.dimension_semantics<parallel>], iteration_bounds = array<i64: 2>, scalar_prefetch = 0 : i64, scratch_operands = 0 : i64, tpu.core_type = #tpu.core_type<tc>, window_params = [{transform_indices = @transform_0, window_bounds = array<i64: 8, 32>}, {pipeline_mode = #tpu.pipeline_mode<synchronous>, transform_indices = @transform_1, window_bounds = array<i64: 32, 128>}, {pipeline_mode = #tpu.pipeline_mode<synchronous>, transform_indices = @transform_2, window_bounds = array<i64: 1, 128>}, {transform_indices = @transform_3, window_bounds = array<i64: 8, 128>}, {transform_indices = @transform_4, window_bounds = array<i64: 8, 128>}]} {
    %c0 = arith.constant 0 : index
    %c0_0 = arith.constant 0 : index
    %0 = vector.load %arg1[%c0, %c0_0] : memref<8x32xf32, #tpu.memory_space<vmem>>, vector<8x32xf32>
    %c0_1 = arith.constant 0 : index
    %c0_2 = arith.constant 0 : index
    %1 = vector.load %arg2[%c0_1, %c0_2] : memref<32x128xf32, #tpu.memory_space<vmem>>, vector<32x128xf32>
    %cst = arith.constant dense<0.000000e+00> : vector<8x128xf32>
    %2 = tpu.matmul %0, %1, %cst {dimension_numbers = #tpu.dot_dimension_numbers<[1], [0], [0], [1], [0, 0, 1, 1], [], []>} : vector<8x32xf32>, vector<32x128xf32>, vector<8x128xf32> -> vector<8x128xf32>
    %c0_3 = arith.constant 0 : index
    %c0_4 = arith.constant 0 : index
    %3 = vector.load %arg3[%c0_3, %c0_4] : memref<1x128xf32, #tpu.memory_space<vmem>>, vector<1x128xf32>
    %4 = vector.broadcast %3 : vector<1x128xf32> to vector<8x128xf32>
    %5 = arith.addf %2, %4 : vector<8x128xf32>
    %cst_5 = arith.constant dense<0xFF800000> : vector<8xf32>
    %6 = vector.multi_reduction <maximumf>, %5, %cst_5 [1] : vector<8x128xf32> to vector<8xf32>
    %7 = vector.shape_cast %6 : vector<8xf32> to vector<8x1xf32>
    %8 = vector.broadcast %7 : vector<8x1xf32> to vector<8x128xf32>
    %9 = arith.subf %5, %8 : vector<8x128xf32>
    %10 = math.exp %9 : vector<8x128xf32>
    %cst_6 = arith.constant dense<0.000000e+00> : vector<8xf32>
    %11 = vector.multi_reduction <add>, %10, %cst_6 [1] : vector<8x128xf32> to vector<8xf32>
    %12 = vector.shape_cast %11 : vector<8xf32> to vector<8x1xf32>
    %13 = math.log %12 : vector<8x1xf32>
    %c0_7 = arith.constant 0 : index
    %c0_8 = arith.constant 0 : index
    %14 = vector.load %arg5[%c0_7, %c0_8] : memref<8x128xf32, #tpu.memory_space<vmem>>, vector<8x128xf32>
    tpu.vector_store %arg5[%c0_7, %c0_8], %5 {strides = array<i32>} : memref<8x128xf32, #tpu.memory_space<vmem>>, vector<8x128xf32>,
    %15 = vector.broadcast %13 : vector<8x1xf32> to vector<8x128xf32>
    %16 = arith.subf %9, %15 : vector<8x128xf32>
    %c0_9 = arith.constant 0 : index
    %c0_10 = arith.constant 0 : index
    %17 = vector.load %arg4[%c0_9, %c0_10] : memref<8x128xf32, #tpu.memory_space<vmem>>, vector<8x128xf32>
    tpu.vector_store %arg4[%c0_9, %c0_10], %16 {strides = array<i32>} : memref<8x128xf32, #tpu.memory_space<vmem>>, vector<8x128xf32>,
    return
  }
  func.func @transform_0(%arg0: i32) -> (i32, i32) {
    %c0_i32 = arith.constant 0 : i32
    %c0_i32_0 = arith.constant 0 : i32
    return %arg0, %c0_i32 : i32, i32
  }
  func.func @transform_1(%arg0: i32) -> (i32, i32) {
    %c0_i32 = arith.constant 0 : i32
    %c0_i32_0 = arith.constant 0 : i32
    %c0_i32_1 = arith.constant 0 : i32
    return %c0_i32, %c0_i32_0 : i32, i32
  }
  func.func @transform_2(%arg0: i32) -> (i32, i32) {
    %c0_i32 = arith.constant 0 : i32
    %c0_i32_0 = arith.constant 0 : i32
    %c0_i32_1 = arith.constant 0 : i32
    return %c0_i32, %c0_i32_0 : i32, i32
  }
  func.func @transform_3(%arg0: i32) -> (i32, i32) {
    %c0_i32 = arith.constant 0 : i32
    %c0_i32_0 = arith.constant 0 : i32
    return %arg0, %c0_i32 : i32, i32
  }
  func.func @transform_4(%arg0: i32) -> (i32, i32) {
    %c0_i32 = arith.constant 0 : i32
    %c0_i32_0 = arith.constant 0 : i32
    return %arg0, %c0_i32 : i32, i32
  }
}

module attributes {stable_mosaic.version = 11 : i64} {
  func.func @_decoder_resident_kernel(%arg0: i32, %arg1: memref<8x32xf32, #tpu.memory_space<vmem>>, %arg2: memref<32x128xf32, #tpu.memory_space<vmem>>, %arg3: memref<1x128xf32, #tpu.memory_space<vmem>>, %arg4: memref<8x128xf32, #tpu.memory_space<vmem>>, %arg5: memref<8x128xf32, #tpu.memory_space<vmem>>) attributes {dimension_semantics = [#tpu.dimension_semantics<parallel>], iteration_bounds = array<i64: 2>, scalar_prefetch = 0 : i64, scratch_operands = 0 : i64, tpu.core_type = #tpu.core_type<tc>, window_params = [{transform_indices = @transform_0, window_bounds = array<i64: 8, 32>}, {pipeline_mode = #tpu.pipeline_mode<synchronous>, transform_indices = @transform_1, window_bounds = array<i64: 32, 128>}, {pipeline_mode = #tpu.pipeline_mode<synchronous>, transform_indices = @transform_2, window_bounds = array<i64: 1, 128>}, {transform_indices = @transform_3, window_bounds = array<i64: 8, 128>}, {transform_indices = @transform_4, window_bounds = array<i64: 8, 128>}]} {
    %c0 = arith.constant 0 : index
    %c0_0 = arith.constant 0 : index
    %0 = vector.load %arg1[%c0, %c0_0] : memref<8x32xf32, #tpu.memory_space<vmem>>, vector<8x32xf32>
    %c0_1 = arith.constant 0 : index
    %c0_2 = arith.constant 0 : index
    %1 = vector.load %arg2[%c0_1, %c0_2] : memref<32x128xf32, #tpu.memory_space<vmem>>, vector<32x128xf32>
    %cst = arith.constant dense<0.000000e+00> : vector<8x128xf32>
    %2 = tpu.matmul %0, %1, %cst {dimension_numbers = #tpu.dot_dimension_numbers<[1], [0], [0], [1], [0, 0, 1, 1], [], []>} : vector<8x32xf32>, vector<32x128xf32>, vector<8x128xf32> -> vector<8x128xf32>
    %c0_3 = arith.constant 0 : index
    %c0_4 = arith.constant 0 : index
    %3 = vector.load %arg3[%c0_3, %c0_4] : memref<1x128xf32, #tpu.memory_space<vmem>>, vector<1x128xf32>
    %4 = vector.broadcast %3 : vector<1x128xf32> to vector<8x128xf32>
    %5 = arith.addf %2, %4 : vector<8x128xf32>
    %cst_5 = arith.constant dense<0xFF800000> : vector<8xf32>
    %6 = vector.multi_reduction <maximumf>, %5, %cst_5 [1] : vector<8x128xf32> to vector<8xf32>
    %7 = vector.shape_cast %6 : vector<8xf32> to vector<8x1xf32>
    %8 = vector.broadcast %7 : vector<8x1xf32> to vector<8x128xf32>
    %9 = arith.subf %5, %8 : vector<8x128xf32>
    %10 = math.exp %9 : vector<8x128xf32>
    %cst_6 = arith.constant dense<0.000000e+00> : vector<8xf32>
    %11 = vector.multi_reduction <add>, %10, %cst_6 [1] : vector<8x128xf32> to vector<8xf32>
    %12 = vector.shape_cast %11 : vector<8xf32> to vector<8x1xf32>
    %13 = math.log %12 : vector<8x1xf32>
    %c0_7 = arith.constant 0 : index
    %c0_8 = arith.constant 0 : index
    %14 = vector.load %arg5[%c0_7, %c0_8] : memref<8x128xf32, #tpu.memory_space<vmem>>, vector<8x128xf32>
    tpu.vector_store %arg5[%c0_7, %c0_8], %5 {strides = array<i32>} : memref<8x128xf32, #tpu.memory_space<vmem>>, vector<8x128xf32>,
    %15 = vector.broadcast %13 : vector<8x1xf32> to vector<8x128xf32>
    %16 = arith.subf %9, %15 : vector<8x128xf32>
    %c0_9 = arith.constant 0 : index
    %c0_10 = arith.constant 0 : index
    %17 = vector.load %arg4[%c0_9, %c0_10] : memref<8x128xf32, #tpu.memory_space<vmem>>, vector<8x128xf32>
    tpu.vector_store %arg4[%c0_9, %c0_10], %16 {strides = array<i32>} : memref<8x128xf32, #tpu.memory_space<vmem>>, vector<8x128xf32>,
    return
  }
  func.func @transform_0(%arg0: i32) -> (i32, i32) {
    %c0_i32 = arith.constant 0 : i32
    %c0_i32_0 = arith.constant 0 : i32
    return %arg0, %c0_i32 : i32, i32
  }
  func.func @transform_1(%arg0: i32) -> (i32, i32) {
    %c0_i32 = arith.constant 0 : i32
    %c0_i32_0 = arith.constant 0 : i32
    %c0_i32_1 = arith.constant 0 : i32
    return %c0_i32, %c0_i32_0 : i32, i32
  }
  func.func @transform_2(%arg0: i32) -> (i32, i32) {
    %c0_i32 = arith.constant 0 : i32
    %c0_i32_0 = arith.constant 0 : i32
    %c0_i32_1 = arith.constant 0 : i32
    return %c0_i32, %c0_i32_0 : i32, i32
  }
  func.func @transform_3(%arg0: i32) -> (i32, i32) {
    %c0_i32 = arith.constant 0 : i32
    %c0_i32_0 = arith.constant 0 : i32
    return %arg0, %c0_i32 : i32, i32
  }
  func.func @transform_4(%arg0: i32) -> (i32, i32) {
    %c0_i32 = arith.constant 0 : i32
    %c0_i32_0 = arith.constant 0 : i32
    return %arg0, %c0_i32 : i32, i32
  }
}

</mosaic_0001>

<bundles_post_ra>
// kernel: tpu_custom_call.1
= control target key start
LH: loop header
LB: loop body
LE: loop exit
PB: predicated region body
PF: predicated region fallthrough
CT: control target
= control target key end

     0   :  { %10 = vsyncpa [#allocation3], 0  ;;  %s1020_s0 = inlined_call_operand.hbm [shape: f32[16,32], index: 0, kind: input, shape index: {}]   ;;  %s1021_s1 = inlined_call_operand.hbm [shape: f32[32,128], index: 1, kind: input, shape index: {}]   ;;  %s1022_s2 = inlined_call_operand.vmem [shape: f32[1,128], index: 2, kind: input, shape index: {}]   ;;  %s1023_s3 = inlined_call_operand.hbm [shape: f32[16,128], index: 3, kind: output, shape index: {0}]   ;;  %s1024_s4 = inlined_call_operand.hbm [shape: f32[16,128], index: 4, kind: output, shape index: {1}]  }
   0x1   :  { %12 = vsyncpa [#allocation3 + $0x1], 0 }
   0x2   :  { %13 = vsyncpa [#allocation6], 0 }
   0x3   :  { %14 = vsyncpa [#allocation4], 0 }
   0x4   :  { %16 = vsyncpa [#allocation4 + $0x1], 0 }
   0x5   :  { %17 = vsyncpa [#allocation9], 0 }
   0x6   :  { %19 = vsyncpa [#allocation9 + $0x1], 0  ;;  %s789_s15 = smov 0   ;;  %s791_s16 = smov 0  }
   0x7   :  { %s793_s17 = smov 0   ;;  %s795_s18 = smov 0  }
   0x8 LB: > { %s810_s19 = sadd.s32 4294967295, %s753_s18   ;;  %s481_s20 = sadd.s32 4294967294, %s753_s18   ;;  %s753_s18 = sphi %s795_s18, %s1044_s18   ;;  %s749_s17 = sphi %s793_s17, %s1043_s17   ;;  %s745_s16 = sphi %s791_s16, %s1042_s16   ;;  %s741_s15 = sphi %s789_s15, %s1041_s15  }
   0x9   : > { %p45_p0 = scmp.ne.s32.totalorder %s745_s16, %s741_s15  ;;  %p1025_p1 = scmp.eq.s32.totalorder %s810_s19, 0 }
   0xa   : > { %p117_p3 = scmp.eq.s32.totalorder %s481_s20, 1  ;;  %p482_p5 = scmp.ge.s32.totalorder %s753_s18, 1 }
   0xb   : > { %p819_p4 = por %p1025_p1, %p45_p0  ;;  %p150_p7 = scmp.lt.s32.totalorder %s753_s18, 3 }
   0xc   : > { %p824_p6 = por %p117_p3, %p45_p0  ;;  %s755_s24 = smov [#allocation5]  }
   0xd   : > { %s1028_s21 = scalar_select %p819_p4, 1, 0 }
   0xe   : > { %s1029_s22 = scalar_select %p824_p6, 1, 0 }
   0xf   : > { %p829_p8 = pnand %p482_p5, %p150_p7  ;;  %s162_s25 = sshll.u32 %s755_s24, 4  ;;  %s833_s25 = int_to_ptr.vmem [resolvable:$true] %s162_s25 }
  0x10   : > { %s845_s27 = sadd.s32 1, %s753_s18   ;;  %s32_s28 = sadd.s32 1, %s749_s17 }
  0x11   : > { %s1030_s23 = scalar_select %p829_p8, 1, 0 }
  0x12   : > { %p532_p9 = pneg %p829_p8  ;;  %s29_s29 = ssub.s32 %s753_s18, %s845_s27 }
  0x13   : > { %s593_s6 = scalar_lea.hbm %s1021_s1, 512 }
  0x14   : > { %p840_p11 = pnand %p532_p9, %p1025_p1  ;;  %p594_p12 = scmp.ne.s32.totalorder %s1021_s1, %s593_s6 }
  0x15   : > { %p600_p5 = scmp.lt.u32.totalorder %s593_s6, %s1021_s1 }
  0x16   : > { %p595_p13 = pneg %p840_p11 }
  0x18   : > { %p596_p0 = pnand %p595_p13, %p594_p12 }
  0x1a   : > { %p597_p3 = pneg %p596_p0 }
  0x1c   : > { %p602_p7 = pnand %p600_p5, %p597_p3 }
  0x1e   : > { %605 = shalt.err (!%p602_p7)
}
  0x1f   : > { %s606_s11 = scalar_lea.vmem %s833_s25, 512  ;;  %p614_p2 = scmp.lt.s32.totalorder %s833_s25, %s833_s25 }
  0x20   : > { %p607_p9 = scmp.ne.s32.totalorder %s833_s25, %s606_s11  ;;  %p615_p6 = scmp.lt.s32.totalorder %s606_s11, %s606_s11 }
  0x22   : > { %p609_p10 = pnand %p607_p9, %p595_p13  ;;  %p616_p4 = por %p615_p6, %p614_p2 }
  0x24   : > { %p610_p1 = pneg %p609_p10 }
  0x26   : > { %p617_p8 = pnand %p616_p4, %p610_p1 }
  0x28   : > { %620 = shalt.err (!%p617_p8)
}
  0x29   : > { %s756_s12 = smov 128   ;;  %s757_s13 = smov 8  }
  0x2a   : > { %535 = dma.hbm_to_vmem [thread:$0]  (!%p840_p11), %s1021_s1, 512, %s833_s25, [#allocation6], %s756_s12, %s756_s12, %s757_s13  }
  0x2b   : > { %p30_p2 = scmp.eq.s32.totalorder %s29_s29, 0  ;;  %p39_p1 = scmp.ne.s32.totalorder %s749_s17, %s745_s16 }
  0x2c   : > { %p40_p4 = scmp.eq.s32.totalorder %s753_s18, 0  ;;  %p548_p6 = scmp.lt.s32.totalorder %s753_s18, 2 }
  0x2d   : > { %s876_s24 = scalar_select %p30_p2, %s749_s17, %s32_s28  }
  0x2e   : > { %p41_p8 = por %p40_p4, %p39_p1  ;;  %p1032_p10 = scmp.eq.s32.totalorder %s810_s19, 1 }
  0x2f   : > { %s179_s5 = sand.u32 1, %s749_s17   ;;  %s486_s6 = sshll.u32 %s753_s18, 7 }
  0x30   : > { %p880_p12 = por %p1032_p10, %p39_p1  ;;  %s485_s7 = sshll.u32 %s179_s5, 3 }
  0x31   : > { %s889_s9 = scalar_lea.hbm %s1020_s0, %s486_s6  ;;  %s183_s25 = scalar_lea.vmem [#allocation2], %s485_s7 }
  0x32   : > { %s190_s28 = sshll.u32 %s183_s25, 4  ;;  %p891_p11 = pnand %p548_p6, %p41_p8  ;;  %s895_s28 = int_to_ptr.vmem [resolvable:$true] %s190_s28 }
  0x33   : > { %s180_s10 = scalar_lea.sflag [#allocation3], %s179_s5  ;;  %s621_s11 = scalar_lea.hbm %s889_s9, 128 }
  0x34   : > { %p622_p13 = scmp.ne.s32.totalorder %s889_s9, %s621_s11  ;;  %p623_p0 = pneg %p891_p11 }
  0x35   : > { %s626_s14 = scalar_lea.hbm %s1020_s0, 256  ;;  %p627_p7 = scmp.lt.u32.totalorder %s889_s9, %s1020_s0 }
  0x36   : > { %p624_p3 = pnand %p623_p0, %p622_p13  ;;  %p628_p9 = scmp.lt.u32.totalorder %s626_s14, %s621_s11 }
  0x37   : > { %p630_p1 = scmp.lt.u32.totalorder %s621_s11, %s889_s9 }
  0x38   : > { %p625_p5 = pneg %p624_p3  ;;  %p629_p2 = por %p628_p9, %p627_p7 }
  0x3a   : > { %p631_p4 = por %p630_p1, %p629_p2 }
  0x3c   : > { %p632_p6 = pnand %p631_p4, %p625_p5 }
  0x3e   : > { %635 = shalt.err (!%p632_p6)
}
  0x3f   : > { %s636_s5 = scalar_lea.vmem %s895_s28, 128  ;;  %s758_s7 = smov [#allocation2]  }
  0x40   : > { %p637_p8 = scmp.ne.s32.totalorder %s895_s28, %s636_s5  ;;  %s641_s26 = sshll.u32 %s758_s7, 4  ;;  %s642_s26 = int_to_ptr.vmem [resolvable:$false] %s641_s26 }
  0x41   : > { %s643_s8 = scalar_lea.vmem %s642_s26, 256  ;;  %p644_p3 = scmp.lt.s32.totalorder %s895_s28, %s642_s26 }
  0x42   : > { %p639_p10 = pnand %p637_p8, %p623_p0  ;;  %p645_p7 = scmp.lt.s32.totalorder %s643_s8, %s636_s5 }
  0x44   : > { %p640_p13 = pneg %p639_p10  ;;  %p646_p9 = por %p645_p7, %p644_p3 }
  0x46   : > { %p647_p2 = pnand %p646_p9, %p640_p13 }
  0x48   : > { %650 = shalt.err (!%p647_p2)
}
  0x49   : > { %539 = dma.hbm_to_vmem [thread:$0]  (!%p891_p11), %s889_s9, 128, %s895_s28, %s180_s10  }
  0x4a   : > { %p1035_p5 = scmp.ne.s32.totalorder %s1030_s23, 0 }
  0x4b   : > { %s925_s25 = sand.u32 (!%p1035_p5), 1, %s745_s16   ;;  %p1036_p0 = scmp.ne.s32.totalorder (!%p1035_p5), %s1028_s21, 0 }
  0x4c   : > { %199 = sbr.rel (%p1035_p5) target bundleno = 639 (0x27f), region = 32  ;;  %s928_s11 = sshll.u32 (!%p1035_p5), %s925_s25, 3 }
  0x4d   : > { %s202_s12 = scalar_lea.sflag (!%p1035_p5), [#allocation3], %s925_s25  ;;  %s205_s13 = scalar_lea.vmem (!%p1035_p5), [#allocation2], %s928_s11 }
  0x53   : > { %724 = dma.done.wait (%p1036_p0), %s202_s12, 128  }
  0x54   : > { %726 = vsyncadd (%p1036_p0), %s202_s12, 4294967168  ;;  %p1037_p11 = scmp.eq.s32.totalorder %s810_s19, 0 }
  0x56   : > { %728 = dma.done.wait (%p1037_p11), [#allocation6], 512   ;;  %p1038_p1 = pmov %p1037_p11 }
  0x57   : > { %v759_v0 = vmov 0.0|0.0   ;;  %vm760_vm0 = vmmov 0   ;;  %v761_v1 = vmov 0.0   ;;  %v240_v2 = vld [vmem:[#allocation5] sm:$0xff]  ;;  %v241_v3 = vld [vmem:[#allocation5 + $0x8] sm:$0xff]  ;;  %v242_v4 = vld [vmem:[#allocation5 + $0x10] sm:$0xff] }
  0x58   : > { %730 = vsyncadd (%p1038_p1), [#allocation6], 4294966784  ;;  %516 = vmatprep.subr.bf16.mxu0 %v759_v0  ;;  %513 = vmatprep.mubr.msk.f32.mxu0 %vm760_vm0, %v761_v1  ;;  %v517_v5 = vpack.c.bf16 %v241_v3, %v240_v2  ;;  %v243_v6 = vld [vmem:[#allocation5 + $0x18] sm:$0xff]  ;;  %vm251_vm1 = vcmask 261120   ;;  %v492_v9 = vld [vmem:[%s1022_s2] ss:$0 sm:$0xff] }
  0x59   : > { %v520_v7 = vpack.c.bf16 %v243_v6, %v242_v4  ;;  %v239_v8 = vld [vmem:[%s205_s13] sm:$0xff]  ;;  %s238_s9 = scalar_lea.vmem [#allocation8], %s928_s11  ;;  %s496_s28 = sshll.u32 %s810_s19, 7 }
  0x5a   : > { %518 = vmatpush3.bf16.msra.mxu0 %v517_v5  ;;  %s950_s14 = scalar_lea.hbm %s1024_s4, %s496_s28  ;;  %s369_s20 = sshll.u32 %s238_s9, 4  ;;  %s370_s20 = int_to_ptr.vmem [resolvable:$true] %s369_s20 }
  0x5b   : > { %519 = vmatprep.subr.bf16.mxu0 %v759_v0  ;;  %s343_s6 = scalar_lea.sflag [#allocation9], %s925_s25  ;;  %s651_s5 = scalar_lea.vmem %s370_s20, 128 }
  0x5c   : > { %p652_p4 = scmp.ne.s32.totalorder %s370_s20, %s651_s5  ;;  %s762_s7 = smov [#allocation8]  }
  0x5d   : > { %s655_s26 = sshll.u32 %s762_s7, 4  ;;  %s656_s26 = int_to_ptr.vmem [resolvable:$false] %s655_s26 }
  0x5e   : > { %521 = vmatpush3.bf16.msra.mxu0 %v520_v7  ;;  %p653_p6 = pnand %p652_p4, %p880_p12  ;;  %s657_s8 = scalar_lea.vmem %s656_s26, 256 }
  0x5f   : > { %p658_p10 = scmp.lt.s32.totalorder %s370_s20, %s656_s26  ;;  %p659_p13 = scmp.lt.s32.totalorder %s657_s8, %s651_s5 }
  0x60   : > { %p654_p8 = pneg %p653_p6 }
  0x61   : > { %514 = vmatmul.mubr.msk.f32.vlgmr.msra.gmra.mrb[0].mxu0 %vm251_vm1, %v239_v8  ;;  %p660_p3 = por %p659_p13, %p658_p10 }
  0x63   : > { %p661_p7 = pnand %p660_p3, %p654_p8 }
 0x134   : > { %v321_v10 = vpop.f32.mrb[0].mxu0 }
 0x135   : > { %v322_v11 = vadd.f32 %v492_v9, %v321_v10  ;;  %v515_v12 = vpop.f32.mrb[1].mxu0 }
 0x137   : > { %334 = vst [vmem:[%s238_s9] sm:$0xff] %v322_v11  ;;  %325 = vmax.xlane.f32.xlu0 %v322_v11 }
 0x1c4   : > { %v326_v13 = vpop.xlane.xlu0 %325 }
 0x1c5   : > { %v327_v14 = vsub.f32 %v322_v11, %v326_v13 }
 0x1c7   : > { %v328_v15 = vmul.f32 1.442695, %v327_v14 }
 0x1c9   : > { %589 = vpow2.f32 %v328_v15 }
 0x1d3   : > { %v590_v16 = vpop.eup %589 }
 0x1d4   : > { %330 = vadd.xlane.f32.xlu0 %v590_v16 }
 0x1d5   : > { %664 = shalt.err (!%p661_p7)
}
 0x1d6   : > { %s665_s12 = scalar_lea.hbm %s950_s14, 128  ;;  %s669_s23 = scalar_lea.hbm %s1024_s4, 256 }
 0x1d7   : > { %p666_p9 = scmp.ne.s32.totalorder %s950_s14, %s665_s12  ;;  %p670_p0 = scmp.lt.u32.totalorder %s950_s14, %s1024_s4 }
 0x1d8   : > { %p671_p11 = scmp.lt.u32.totalorder %s669_s23, %s665_s12  ;;  %p673_p4 = scmp.lt.u32.totalorder %s665_s12, %s950_s14 }
 0x1d9   : > { %p667_p2 = pnand %p666_p9, %p880_p12 }
 0x1da   : > { %p672_p1 = por %p671_p11, %p670_p0 }
 0x1db   : > { %p668_p5 = pneg %p667_p2 }
 0x1dc   : > { %p674_p6 = por %p673_p4, %p672_p1 }
 0x1de   : > { %p675_p8 = pnand %p674_p6, %p668_p5 }
 0x1e0   : > { %678 = shalt.err (!%p675_p8)
}
 0x1e1   : > { %529 = dma.vmem_to_hbm [thread:$0]  (%p880_p12), %s370_s20, 128, %s950_s14, %s343_s6  }
 0x1e2   : > { %s231_s10 = scalar_lea.vmem [#allocation7], %s928_s11  ;;  %s976_s8 = scalar_lea.hbm %s1023_s3, %s496_s28 }
 0x1e3   : > { %s356_s5 = sshll.u32 %s231_s10, 4  ;;  %s338_s14 = scalar_lea.sflag [#allocation4], %s925_s25  ;;  %s978_s5 = int_to_ptr.vmem [resolvable:$true] %s356_s5 }
 0x1e4   : > { %s679_s20 = scalar_lea.vmem %s978_s5, 128  ;;  %s763_s11 = smov [#allocation7]  }
 0x1e5   : > { %p680_p10 = scmp.ne.s32.totalorder %s978_s5, %s679_s20  ;;  %s683_s6 = sshll.u32 %s763_s11, 4  ;;  %s684_s6 = int_to_ptr.vmem [resolvable:$false] %s683_s6 }
 0x1e6   : > { %s685_s19 = scalar_lea.vmem %s684_s6, 256  ;;  %p686_p7 = scmp.lt.s32.totalorder %s978_s5, %s684_s6 }
 0x1e7   : > { %p681_p13 = pnand %p680_p10, %p880_p12  ;;  %p687_p9 = scmp.lt.s32.totalorder %s685_s19, %s679_s20 }
 0x1e9   : > { %p682_p3 = pneg %p681_p13  ;;  %p688_p2 = por %p687_p9, %p686_p7 }
 0x1eb   : > { %p689_p5 = pnand %p688_p2, %p682_p3 }
 0x261   : > { %v331_v17 = vpop.xlane.xlu0 %330 }
 0x262   : > { %591 = vlog2.f32 %v331_v17 }
 0x26c   : > { %v592_v18 = vpop.eup %591 }
 0x26d   : > { %v333_v19 = vmul.f32 0.6931472, %v592_v18 }
 0x26f   : > { %v335_v20 = vsub.f32 %v327_v14, %v333_v19 }
 0x271   : > { %336 = vst [vmem:[%s231_s10] sm:$0xff] %v335_v20 }
 0x272   : > { %692 = shalt.err (!%p689_p5)
}
 0x273   : > { %s693_s25 = scalar_lea.hbm %s976_s8, 128  ;;  %s697_s13 = scalar_lea.hbm %s1023_s3, 256 }
 0x274   : > { %p694_p0 = scmp.ne.s32.totalorder %s976_s8, %s693_s25  ;;  %p698_p4 = scmp.lt.u32.totalorder %s976_s8, %s1023_s3 }
 0x275   : > { %p699_p6 = scmp.lt.u32.totalorder %s697_s13, %s693_s25  ;;  %p701_p10 = scmp.lt.u32.totalorder %s693_s25, %s976_s8 }
 0x276   : > { %p695_p11 = pnand %p694_p0, %p880_p12 }
 0x277   : > { %p700_p8 = por %p699_p6, %p698_p4 }
 0x278   : > { %p696_p1 = pneg %p695_p11 }
 0x279   : > { %p702_p13 = por %p701_p10, %p700_p8 }
 0x27b   : > { %p703_p3 = pnand %p702_p13, %p696_p1 }
 0x27d   : > { %706 = shalt.err (!%p703_p3)
}
 0x27e   : > { %528 = dma.vmem_to_hbm [thread:$0]  (%p880_p12), %s978_s5, 128, %s976_s8, %s338_s14  }
 0x27f PF: > { %s381_s9 = sand.u32 1, %s741_s15   ;;  %p1039_p7 = scmp.ne.s32.totalorder %s1029_s22, 0 }
 0x280   : > { %p1040_p9 = scmp.ge.s32.totalorder %s753_s18, 2  ;;  %s382_s29 = scalar_lea.sflag [#allocation4], %s381_s9 }
 0x282   : > { %p541_p2 = pnand %p1040_p9, %p1039_p7 }
 0x284   : > { %732 = dma.done.wait (!%p541_p2), %s382_s29, 128  }
 0x285   : > { %734 = vsyncadd (!%p541_p2), %s382_s29, 4294967168  ;;  %s391_s10 = scalar_lea.sflag [#allocation9], %s381_s9 }
 0x286   : > { %736 = dma.done.wait (!%p541_p2), %s391_s10, 128  }
 0x287   : > { %738 = vsyncadd (!%p541_p2), %s391_s10, 4294967168  ;;  %p22_p12 = scmp.ge.s32.totalorder %s845_s27, 4   ;;  %s1041_s15 = smov %s745_s16 }
 0x288   : > { %s1042_s16 = smov %s749_s17  ;;  %s1043_s17 = smov %s876_s24 }
 0x289   : > { %s1044_s18 = smov %s845_s27  ;;  %24 = sbr.rel (!%p22_p12) target bundleno = 8 (0x8), region = 98 }
 0x290   :  { %396 = vsyncpa [#allocation3], 1 }
 0x291   :  { %398 = vsyncpa [#allocation3 + $0x1], 1 }
 0x292   :  { %399 = vsyncpa [#allocation6], 1 }
 0x293   :  { %400 = vsyncpa [#allocation4], 1 }
 0x294   :  { %402 = vsyncpa [#allocation4 + $0x1], 1 }
 0x295   :  { %403 = vsyncpa [#allocation9], 1 }
 0x296   :  { %405 = vsyncpa [#allocation9 + $0x1], 1 }

// kernel: tpu_custom_call.1
= control target key start
LH: loop header
LB: loop body
LE: loop exit
PB: predicated region body
PF: predicated region fallthrough
CT: control target
= control target key end

     0   :  { %10 = vsyncpa [#allocation3], 0  ;;  %s1020_s0 = inlined_call_operand.hbm [shape: f32[16,32], index: 0, kind: input, shape index: {}]   ;;  %s1021_s1 = inlined_call_operand.hbm [shape: f32[32,128], index: 1, kind: input, shape index: {}]   ;;  %s1022_s2 = inlined_call_operand.vmem [shape: f32[1,128], index: 2, kind: input, shape index: {}]   ;;  %s1023_s3 = inlined_call_operand.hbm [shape: f32[16,128], index: 3, kind: output, shape index: {0}]   ;;  %s1024_s4 = inlined_call_operand.hbm [shape: f32[16,128], index: 4, kind: output, shape index: {1}]  }
   0x1   :  { %12 = vsyncpa [#allocation3 + $0x1], 0 }
   0x2   :  { %13 = vsyncpa [#allocation6], 0 }
   0x3   :  { %14 = vsyncpa [#allocation4], 0 }
   0x4   :  { %16 = vsyncpa [#allocation4 + $0x1], 0 }
   0x5   :  { %17 = vsyncpa [#allocation9], 0 }
   0x6   :  { %19 = vsyncpa [#allocation9 + $0x1], 0  ;;  %s789_s15 = smov 0   ;;  %s791_s16 = smov 0  }
   0x7   :  { %s793_s17 = smov 0   ;;  %s795_s18 = smov 0  }
   0x8 LB: > { %s810_s19 = sadd.s32 4294967295, %s753_s18   ;;  %s481_s20 = sadd.s32 4294967294, %s753_s18   ;;  %s753_s18 = sphi %s795_s18, %s1044_s18   ;;  %s749_s17 = sphi %s793_s17, %s1043_s17   ;;  %s745_s16 = sphi %s791_s16, %s1042_s16   ;;  %s741_s15 = sphi %s789_s15, %s1041_s15  }
   0x9   : > { %p45_p0 = scmp.ne.s32.totalorder %s745_s16, %s741_s15  ;;  %p1025_p1 = scmp.eq.s32.totalorder %s810_s19, 0 }
   0xa   : > { %p117_p3 = scmp.eq.s32.totalorder %s481_s20, 1  ;;  %p482_p5 = scmp.ge.s32.totalorder %s753_s18, 1 }
   0xb   : > { %p819_p4 = por %p1025_p1, %p45_p0  ;;  %p150_p7 = scmp.lt.s32.totalorder %s753_s18, 3 }
   0xc   : > { %p824_p6 = por %p117_p3, %p45_p0  ;;  %s755_s24 = smov [#allocation5]  }
   0xd   : > { %s1028_s21 = scalar_select %p819_p4, 1, 0 }
   0xe   : > { %s1029_s22 = scalar_select %p824_p6, 1, 0 }
   0xf   : > { %p829_p8 = pnand %p482_p5, %p150_p7  ;;  %s162_s25 = sshll.u32 %s755_s24, 4  ;;  %s833_s25 = int_to_ptr.vmem [resolvable:$true] %s162_s25 }
  0x10   : > { %s845_s27 = sadd.s32 1, %s753_s18   ;;  %s32_s28 = sadd.s32 1, %s749_s17 }
  0x11   : > { %s1030_s23 = scalar_select %p829_p8, 1, 0 }
  0x12   : > { %p532_p9 = pneg %p829_p8  ;;  %s29_s29 = ssub.s32 %s753_s18, %s845_s27 }
  0x13   : > { %s593_s6 = scalar_lea.hbm %s1021_s1, 512 }
  0x14   : > { %p840_p11 = pnand %p532_p9, %p1025_p1  ;;  %p594_p12 = scmp.ne.s32.totalorder %s1021_s1, %s593_s6 }
  0x15   : > { %p600_p5 = scmp.lt.u32.totalorder %s593_s6, %s1021_s1 }
  0x16   : > { %p595_p13 = pneg %p840_p11 }
  0x18   : > { %p596_p0 = pnand %p595_p13, %p594_p12 }
  0x1a   : > { %p597_p3 = pneg %p596_p0 }
  0x1c   : > { %p602_p7 = pnand %p600_p5, %p597_p3 }
  0x1e   : > { %605 = shalt.err (!%p602_p7)
}
  0x1f   : > { %s606_s11 = scalar_lea.vmem %s833_s25, 512  ;;  %p614_p2 = scmp.lt.s32.totalorder %s833_s25, %s833_s25 }
  0x20   : > { %p607_p9 = scmp.ne.s32.totalorder %s833_s25, %s606_s11  ;;  %p615_p6 = scmp.lt.s32.totalorder %s606_s11, %s606_s11 }
  0x22   : > { %p609_p10 = pnand %p607_p9, %p595_p13  ;;  %p616_p4 = por %p615_p6, %p614_p2 }
  0x24   : > { %p610_p1 = pneg %p609_p10 }
  0x26   : > { %p617_p8 = pnand %p616_p4, %p610_p1 }
  0x28   : > { %620 = shalt.err (!%p617_p8)
}
  0x29   : > { %s756_s12 = smov 128   ;;  %s757_s13 = smov 8  }
  0x2a   : > { %535 = dma.hbm_to_vmem [thread:$0]  (!%p840_p11), %s1021_s1, 512, %s833_s25, [#allocation6], %s756_s12, %s756_s12, %s757_s13  }
  0x2b   : > { %p30_p2 = scmp.eq.s32.totalorder %s29_s29, 0  ;;  %p39_p1 = scmp.ne.s32.totalorder %s749_s17, %s745_s16 }
  0x2c   : > { %p40_p4 = scmp.eq.s32.totalorder %s753_s18, 0  ;;  %p548_p6 = scmp.lt.s32.totalorder %s753_s18, 2 }
  0x2d   : > { %s876_s24 = scalar_select %p30_p2, %s749_s17, %s32_s28  }
  0x2e   : > { %p41_p8 = por %p40_p4, %p39_p1  ;;  %p1032_p10 = scmp.eq.s32.totalorder %s810_s19, 1 }
  0x2f   : > { %s179_s5 = sand.u32 1, %s749_s17   ;;  %s486_s6 = sshll.u32 %s753_s18, 7 }
  0x30   : > { %p880_p12 = por %p1032_p10, %p39_p1  ;;  %s485_s7 = sshll.u32 %s179_s5, 3 }
  0x31   : > { %s889_s9 = scalar_lea.hbm %s1020_s0, %s486_s6  ;;  %s183_s25 = scalar_lea.vmem [#allocation2], %s485_s7 }
  0x32   : > { %s190_s28 = sshll.u32 %s183_s25, 4  ;;  %p891_p11 = pnand %p548_p6, %p41_p8  ;;  %s895_s28 = int_to_ptr.vmem [resolvable:$true] %s190_s28 }
  0x33   : > { %s180_s10 = scalar_lea.sflag [#allocation3], %s179_s5  ;;  %s621_s11 = scalar_lea.hbm %s889_s9, 128 }
  0x34   : > { %p622_p13 = scmp.ne.s32.totalorder %s889_s9, %s621_s11  ;;  %p623_p0 = pneg %p891_p11 }
  0x35   : > { %s626_s14 = scalar_lea.hbm %s1020_s0, 256  ;;  %p627_p7 = scmp.lt.u32.totalorder %s889_s9, %s1020_s0 }
  0x36   : > { %p624_p3 = pnand %p623_p0, %p622_p13  ;;  %p628_p9 = scmp.lt.u32.totalorder %s626_s14, %s621_s11 }
  0x37   : > { %p630_p1 = scmp.lt.u32.totalorder %s621_s11, %s889_s9 }
  0x38   : > { %p625_p5 = pneg %p624_p3  ;;  %p629_p2 = por %p628_p9, %p627_p7 }
  0x3a   : > { %p631_p4 = por %p630_p1, %p629_p2 }
  0x3c   : > { %p632_p6 = pnand %p631_p4, %p625_p5 }
  0x3e   : > { %635 = shalt.err (!%p632_p6)
}
  0x3f   : > { %s636_s5 = scalar_lea.vmem %s895_s28, 128  ;;  %s758_s7 = smov [#allocation2]  }
  0x40   : > { %p637_p8 = scmp.ne.s32.totalorder %s895_s28, %s636_s5  ;;  %s641_s26 = sshll.u32 %s758_s7, 4  ;;  %s642_s26 = int_to_ptr.vmem [resolvable:$false] %s641_s26 }
  0x41   : > { %s643_s8 = scalar_lea.vmem %s642_s26, 256  ;;  %p644_p3 = scmp.lt.s32.totalorder %s895_s28, %s642_s26 }
  0x42   : > { %p639_p10 = pnand %p637_p8, %p623_p0  ;;  %p645_p7 = scmp.lt.s32.totalorder %s643_s8, %s636_s5 }
  0x44   : > { %p640_p13 = pneg %p639_p10  ;;  %p646_p9 = por %p645_p7, %p644_p3 }
  0x46   : > { %p647_p2 = pnand %p646_p9, %p640_p13 }
  0x48   : > { %650 = shalt.err (!%p647_p2)
}
  0x49   : > { %539 = dma.hbm_to_vmem [thread:$0]  (!%p891_p11), %s889_s9, 128, %s895_s28, %s180_s10  }
  0x4a   : > { %p1035_p5 = scmp.ne.s32.totalorder %s1030_s23, 0 }
  0x4b   : > { %s925_s25 = sand.u32 (!%p1035_p5), 1, %s745_s16   ;;  %p1036_p0 = scmp.ne.s32.totalorder (!%p1035_p5), %s1028_s21, 0 }
  0x4c   : > { %199 = sbr.rel (%p1035_p5) target bundleno = 639 (0x27f), region = 32  ;;  %s928_s11 = sshll.u32 (!%p1035_p5), %s925_s25, 3 }
  0x4d   : > { %s202_s12 = scalar_lea.sflag (!%p1035_p5), [#allocation3], %s925_s25  ;;  %s205_s13 = scalar_lea.vmem (!%p1035_p5), [#allocation2], %s928_s11 }
  0x53   : > { %724 = dma.done.wait (%p1036_p0), %s202_s12, 128  }
  0x54   : > { %726 = vsyncadd (%p1036_p0), %s202_s12, 4294967168  ;;  %p1037_p11 = scmp.eq.s32.totalorder %s810_s19, 0 }
  0x56   : > { %728 = dma.done.wait (%p1037_p11), [#allocation6], 512   ;;  %p1038_p1 = pmov %p1037_p11 }
  0x57   : > { %v759_v0 = vmov 0.0|0.0   ;;  %vm760_vm0 = vmmov 0   ;;  %v761_v1 = vmov 0.0   ;;  %v240_v2 = vld [vmem:[#allocation5] sm:$0xff]  ;;  %v241_v3 = vld [vmem:[#allocation5 + $0x8] sm:$0xff]  ;;  %v242_v4 = vld [vmem:[#allocation5 + $0x10] sm:$0xff] }
  0x58   : > { %730 = vsyncadd (%p1038_p1), [#allocation6], 4294966784  ;;  %516 = vmatprep.subr.bf16.mxu0 %v759_v0  ;;  %513 = vmatprep.mubr.msk.f32.mxu0 %vm760_vm0, %v761_v1  ;;  %v517_v5 = vpack.c.bf16 %v241_v3, %v240_v2  ;;  %v243_v6 = vld [vmem:[#allocation5 + $0x18] sm:$0xff]  ;;  %vm251_vm1 = vcmask 261120   ;;  %v492_v9 = vld [vmem:[%s1022_s2] ss:$0 sm:$0xff] }
  0x59   : > { %v520_v7 = vpack.c.bf16 %v243_v6, %v242_v4  ;;  %v239_v8 = vld [vmem:[%s205_s13] sm:$0xff]  ;;  %s238_s9 = scalar_lea.vmem [#allocation8], %s928_s11  ;;  %s496_s28 = sshll.u32 %s810_s19, 7 }
  0x5a   : > { %518 = vmatpush3.bf16.msra.mxu0 %v517_v5  ;;  %s950_s14 = scalar_lea.hbm %s1024_s4, %s496_s28  ;;  %s369_s20 = sshll.u32 %s238_s9, 4  ;;  %s370_s20 = int_to_ptr.vmem [resolvable:$true] %s369_s20 }
  0x5b   : > { %519 = vmatprep.subr.bf16.mxu0 %v759_v0  ;;  %s343_s6 = scalar_lea.sflag [#allocation9], %s925_s25  ;;  %s651_s5 = scalar_lea.vmem %s370_s20, 128 }
  0x5c   : > { %p652_p4 = scmp.ne.s32.totalorder %s370_s20, %s651_s5  ;;  %s762_s7 = smov [#allocation8]  }
  0x5d   : > { %s655_s26 = sshll.u32 %s762_s7, 4  ;;  %s656_s26 = int_to_ptr.vmem [resolvable:$false] %s655_s26 }
  0x5e   : > { %521 = vmatpush3.bf16.msra.mxu0 %v520_v7  ;;  %p653_p6 = pnand %p652_p4, %p880_p12  ;;  %s657_s8 = scalar_lea.vmem %s656_s26, 256 }
  0x5f   : > { %p658_p10 = scmp.lt.s32.totalorder %s370_s20, %s656_s26  ;;  %p659_p13 = scmp.lt.s32.totalorder %s657_s8, %s651_s5 }
  0x60   : > { %p654_p8 = pneg %p653_p6 }
  0x61   : > { %514 = vmatmul.mubr.msk.f32.vlgmr.msra.gmra.mrb[0].mxu0 %vm251_vm1, %v239_v8  ;;  %p660_p3 = por %p659_p13, %p658_p10 }
  0x63   : > { %p661_p7 = pnand %p660_p3, %p654_p8 }
 0x134   : > { %v321_v10 = vpop.f32.mrb[0].mxu0 }
 0x135   : > { %v322_v11 = vadd.f32 %v492_v9, %v321_v10  ;;  %v515_v12 = vpop.f32.mrb[1].mxu0 }
 0x137   : > { %334 = vst [vmem:[%s238_s9] sm:$0xff] %v322_v11  ;;  %325 = vmax.xlane.f32.xlu0 %v322_v11 }
 0x1c4   : > { %v326_v13 = vpop.xlane.xlu0 %325 }
 0x1c5   : > { %v327_v14 = vsub.f32 %v322_v11, %v326_v13 }
 0x1c7   : > { %v328_v15 = vmul.f32 1.442695, %v327_v14 }
 0x1c9   : > { %589 = vpow2.f32 %v328_v15 }
 0x1d3   : > { %v590_v16 = vpop.eup %589 }
 0x1d4   : > { %330 = vadd.xlane.f32.xlu0 %v590_v16 }
 0x1d5   : > { %664 = shalt.err (!%p661_p7)
}
 0x1d6   : > { %s665_s12 = scalar_lea.hbm %s950_s14, 128  ;;  %s669_s23 = scalar_lea.hbm %s1024_s4, 256 }
 0x1d7   : > { %p666_p9 = scmp.ne.s32.totalorder %s950_s14, %s665_s12  ;;  %p670_p0 = scmp.lt.u32.totalorder %s950_s14, %s1024_s4 }
 0x1d8   : > { %p671_p11 = scmp.lt.u32.totalorder %s669_s23, %s665_s12  ;;  %p673_p4 = scmp.lt.u32.totalorder %s665_s12, %s950_s14 }
 0x1d9   : > { %p667_p2 = pnand %p666_p9, %p880_p12 }
 0x1da   : > { %p672_p1 = por %p671_p11, %p670_p0 }
 0x1db   : > { %p668_p5 = pneg %p667_p2 }
 0x1dc   : > { %p674_p6 = por %p673_p4, %p672_p1 }
 0x1de   : > { %p675_p8 = pnand %p674_p6, %p668_p5 }
 0x1e0   : > { %678 = shalt.err (!%p675_p8)
}
 0x1e1   : > { %529 = dma.vmem_to_hbm [thread:$0]  (%p880_p12), %s370_s20, 128, %s950_s14, %s343_s6  }
 0x1e2   : > { %s231_s10 = scalar_lea.vmem [#allocation7], %s928_s11  ;;  %s976_s8 = scalar_lea.hbm %s1023_s3, %s496_s28 }
 0x1e3   : > { %s356_s5 = sshll.u32 %s231_s10, 4  ;;  %s338_s14 = scalar_lea.sflag [#allocation4], %s925_s25  ;;  %s978_s5 = int_to_ptr.vmem [resolvable:$true] %s356_s5 }
 0x1e4   : > { %s679_s20 = scalar_lea.vmem %s978_s5, 128  ;;  %s763_s11 = smov [#allocation7]  }
 0x1e5   : > { %p680_p10 = scmp.ne.s32.totalorder %s978_s5, %s679_s20  ;;  %s683_s6 = sshll.u32 %s763_s11, 4  ;;  %s684_s6 = int_to_ptr.vmem [resolvable:$false] %s683_s6 }
 0x1e6   : > { %s685_s19 = scalar_lea.vmem %s684_s6, 256  ;;  %p686_p7 = scmp.lt.s32.totalorder %s978_s5, %s684_s6 }
 0x1e7   : > { %p681_p13 = pnand %p680_p10, %p880_p12  ;;  %p687_p9 = scmp.lt.s32.totalorder %s685_s19, %s679_s20 }
 0x1e9   : > { %p682_p3 = pneg %p681_p13  ;;  %p688_p2 = por %p687_p9, %p686_p7 }
 0x1eb   : > { %p689_p5 = pnand %p688_p2, %p682_p3 }
 0x261   : > { %v331_v17 = vpop.xlane.xlu0 %330 }
 0x262   : > { %591 = vlog2.f32 %v331_v17 }
 0x26c   : > { %v592_v18 = vpop.eup %591 }
 0x26d   : > { %v333_v19 = vmul.f32 0.6931472, %v592_v18 }
 0x26f   : > { %v335_v20 = vsub.f32 %v327_v14, %v333_v19 }
 0x271   : > { %336 = vst [vmem:[%s231_s10] sm:$0xff] %v335_v20 }
 0x272   : > { %692 = shalt.err (!%p689_p5)
}
 0x273   : > { %s693_s25 = scalar_lea.hbm %s976_s8, 128  ;;  %s697_s13 = scalar_lea.hbm %s1023_s3, 256 }
 0x274   : > { %p694_p0 = scmp.ne.s32.totalorder %s976_s8, %s693_s25  ;;  %p698_p4 = scmp.lt.u32.totalorder %s976_s8, %s1023_s3 }
 0x275   : > { %p699_p6 = scmp.lt.u32.totalorder %s697_s13, %s693_s25  ;;  %p701_p10 = scmp.lt.u32.totalorder %s693_s25, %s976_s8 }
 0x276   : > { %p695_p11 = pnand %p694_p0, %p880_p12 }
 0x277   : > { %p700_p8 = por %p699_p6, %p698_p4 }
 0x278   : > { %p696_p1 = pneg %p695_p11 }
 0x279   : > { %p702_p13 = por %p701_p10, %p700_p8 }
 0x27b   : > { %p703_p3 = pnand %p702_p13, %p696_p1 }
 0x27d   : > { %706 = shalt.err (!%p703_p3)
}
 0x27e   : > { %528 = dma.vmem_to_hbm [thread:$0]  (%p880_p12), %s978_s5, 128, %s976_s8, %s338_s14  }
 0x27f PF: > { %s381_s9 = sand.u32 1, %s741_s15   ;;  %p1039_p7 = scmp.ne.s32.totalorder %s1029_s22, 0 }
 0x280   : > { %p1040_p9 = scmp.ge.s32.totalorder %s753_s18, 2  ;;  %s382_s29 = scalar_lea.sflag [#allocation4], %s381_s9 }
 0x282   : > { %p541_p2 = pnand %p1040_p9, %p1039_p7 }
 0x284   : > { %732 = dma.done.wait (!%p541_p2), %s382_s29, 128  }
 0x285   : > { %734 = vsyncadd (!%p541_p2), %s382_s29, 4294967168  ;;  %s391_s10 = scalar_lea.sflag [#allocation9], %s381_s9 }
 0x286   : > { %736 = dma.done.wait (!%p541_p2), %s391_s10, 128  }
 0x287   : > { %738 = vsyncadd (!%p541_p2), %s391_s10, 4294967168  ;;  %p22_p12 = scmp.ge.s32.totalorder %s845_s27, 4   ;;  %s1041_s15 = smov %s745_s16 }
 0x288   : > { %s1042_s16 = smov %s749_s17  ;;  %s1043_s17 = smov %s876_s24 }
 0x289   : > { %s1044_s18 = smov %s845_s27  ;;  %24 = sbr.rel (!%p22_p12) target bundleno = 8 (0x8), region = 98 }
 0x290   :  { %396 = vsyncpa [#allocation3], 1 }
 0x291   :  { %398 = vsyncpa [#allocation3 + $0x1], 1 }
 0x292   :  { %399 = vsyncpa [#allocation6], 1 }
 0x293   :  { %400 = vsyncpa [#allocation4], 1 }
 0x294   :  { %402 = vsyncpa [#allocation4 + $0x1], 1 }
 0x295   :  { %403 = vsyncpa [#allocation9], 1 }
 0x296   :  { %405 = vsyncpa [#allocation9 + $0x1], 1 }

</bundles_post_ra>
